<compile_context>
chip_gen: v5e
topology: v5e:2x2
jax: 0.10.0
libtpu: 0.0.40
codegen_flags: <defaults>
</compile_context>

<pallas_src>
import functools

import jax
import jax.numpy as jnp
from jax.experimental import pallas as pl
from jax.experimental.pallas import tpu as pltpu

BN_EPS = 1e-5
PAD = 128          # lane-dense feature padding (vreg lane width / MXU width)
TILE_B = 8         # batch tile: multiple of 8 sublanes; raise to 256-512 for large B


# ---------------------------------------------------------------------------
# Single fused kernel: whole VAE forward
# ---------------------------------------------------------------------------
def _vae_fused_kernel(*refs, n_enc, n_dec, pad):
    it = iter(refs)
    x_ref = next(it)
    eps_ref = next(it)
    enc = [(next(it), next(it)) for _ in range(n_enc)]
    head_w_ref = next(it)
    head_b_ref = next(it)
    dec = [(next(it), next(it)) for _ in range(n_dec)]
    recon_ref = next(it)
    mean_ref = next(it)
    logvar_ref = next(it)

    # ---- encoder (BN already folded into W/b; Dropout is identity in eval) ----
    h = x_ref[...]
    for w_ref, b_ref in enc:
        h = jnp.tanh(
            jnp.dot(h, w_ref[...], preferred_element_type=jnp.float32) + b_ref[...]
        )

    # ---- packed mean/logvar heads: one MXU matmul, then lane-slice ----
    y = jnp.dot(h, head_w_ref[...], preferred_element_type=jnp.float32) + head_b_ref[...]
    mean = y[:, :pad]
    logvar = y[:, pad:]
    z = mean + logvar * eps_ref[...]      # reference semantics: logvar used as std
    mean_ref[...] = mean
    logvar_ref[...] = logvar

    # ---- decoder (last Linear has no activation) ----
    d = z
    for i, (w_ref, b_ref) in enumerate(dec):
        d = jnp.dot(d, w_ref[...], preferred_element_type=jnp.float32) + b_ref[...]
        if i != n_dec - 1:
            d = jnp.tanh(d)
    recon_ref[...] = d


# ---------------------------------------------------------------------------
# Parameter preparation: fold BN, pad to lane-dense layout, pack heads
# ---------------------------------------------------------------------------
def _pad2(a, rows, cols):
    r, c = a.shape
    return jnp.pad(a, ((0, rows - r), (0, cols - c)))


def _fold_bn(bn, w, b):
    """Eval-mode BatchNorm folded into the following Linear. Exact (running stats)."""
    gamma, beta, rmean, rvar = bn                       # all (1, fin)
    scale = gamma * jax.lax.rsqrt(rvar + BN_EPS)        # (1, fin)
    w_f = w * scale.T                                   # diag(scale) @ W
    b_f = b + (beta - rmean * scale) @ w                # (1, fout)
    return w_f, b_f


def pack_params(params, pad=PAD):
    """Fold BN, zero-pad every matrix to [pad, pad] / [1, pad], pack the two heads."""
    enc = []
    for bn, w, b in params["encoder"]:
        wf, bf = _fold_bn(bn, w, b)
        enc.append((_pad2(wf, pad, pad), _pad2(bf, 1, pad)))

    wm, bm = params["mean"]
    wv, bv = params["logvar"]
    head_w = jnp.concatenate([_pad2(wm, pad, pad), _pad2(wv, pad, pad)], axis=1)
    head_b = jnp.concatenate([_pad2(bm, 1, pad), _pad2(bv, 1, pad)], axis=1)

    dec = []
    for bn, w, b in params["decoder"]:
        wf, bf = _fold_bn(bn, w, b)
        dec.append((_pad2(wf, pad, pad), _pad2(bf, 1, pad)))

    return {"enc": enc, "head_w": head_w, "head_b": head_b, "dec": dec}


# ---------------------------------------------------------------------------
# Wrapper: one pallas_call for the whole forward pass
# ---------------------------------------------------------------------------
def vae_forward(x, eps, packed, *, input_features, latent_features,
                pad=PAD, tile_b=TILE_B):
    B = x.shape[0]
    n_enc = len(packed["enc"])
    n_dec = len(packed["dec"])
    b_pad = pl.cdiv(B, tile_b) * tile_b

    x_p = _pad2(x.astype(jnp.float32), b_pad, pad)
    eps_p = _pad2(eps.astype(jnp.float32), b_pad, pad)

    flat_in = [x_p, eps_p]
    for w, b in packed["enc"]:
        flat_in += [w, b]
    flat_in += [packed["head_w"], packed["head_b"]]
    for w, b in packed["dec"]:
        flat_in += [w, b]

    act_spec = pl.BlockSpec((tile_b, pad), lambda i: (i, 0))
    w_spec = pl.BlockSpec((pad, pad), lambda i: (0, 0))
    b_spec = pl.BlockSpec((1, pad), lambda i: (0, 0))
    head_w_spec = pl.BlockSpec((pad, 2 * pad), lambda i: (0, 0))
    head_b_spec = pl.BlockSpec((1, 2 * pad), lambda i: (0, 0))

    in_specs = [act_spec, act_spec]
    in_specs += [w_spec, b_spec] * n_enc
    in_specs += [head_w_spec, head_b_spec]
    in_specs += [w_spec, b_spec] * n_dec

    out_sds = jax.ShapeDtypeStruct((b_pad, pad), jnp.float32)
    kernel = functools.partial(_vae_fused_kernel, n_enc=n_enc, n_dec=n_dec, pad=pad)

    recon_p, mean_p, logvar_p = pl.pallas_call(
        kernel,
        grid=(b_pad // tile_b,),
        out_shape=(out_sds, out_sds, out_sds),
        in_specs=in_specs,
        out_specs=(act_spec, act_spec, act_spec),
        compiler_params=pltpu.CompilerParams(dimension_semantics=("parallel",)),
    )(*flat_in)

    recon = recon_p[:B, :input_features]
    mean = mean_p[:B, :latent_features]
    logvar = logvar_p[:B, :latent_features]
    return recon, mean, logvar


# ---------------------------------------------------------------------------
# Deterministic parameter construction (shapes from _VAEBase.__init__)
# ---------------------------------------------------------------------------
def init_linear(key, fan_in, fan_out):
    kw, kb = jax.random.split(key)
    bound = 1.0 / (fan_in ** 0.5)
    w = jax.random.uniform(kw, (fan_in, fan_out), jnp.float32, -bound, bound)
    b = jax.random.uniform(kb, (1, fan_out), jnp.float32, -bound, bound)
    return w, b


def init_bn(key, f):
    k1, k2, k3, k4 = jax.random.split(key, 4)
    gamma = 1.0 + 0.1 * jax.random.normal(k1, (1, f), jnp.float32)
    beta = 0.1 * jax.random.normal(k2, (1, f), jnp.float32)
    rmean = 0.1 * jax.random.normal(k3, (1, f), jnp.float32)
    rvar = 1.0 + 0.1 * jax.random.uniform(k4, (1, f), jnp.float32)
    return gamma, beta, rmean, rvar


def build_params(key, input_features, latent_features, hidden_layers):
    params = {"encoder": [], "decoder": []}

    enc_neurons = [input_features] + hidden_layers
    for i in range(len(enc_neurons) - 1):
        key, kb, kl = jax.random.split(key, 3)
        bn = init_bn(kb, enc_neurons[i])
        w, b = init_linear(kl, enc_neurons[i], enc_neurons[i + 1])
        params["encoder"].append((bn, w, b))

    hidden_last = hidden_layers[-1] if len(hidden_layers) > 0 else input_features
    key, km, kv = jax.random.split(key, 3)
    params["mean"] = init_linear(km, hidden_last, latent_features)
    params["logvar"] = init_linear(kv, hidden_last, latent_features)

    dec_neurons = [latent_features] + hidden_layers + [input_features]
    for i in range(len(dec_neurons) - 1):
        key, kb, kl = jax.random.split(key, 3)
        bn = init_bn(kb, dec_neurons[i])
        w, b = init_linear(kl, dec_neurons[i], dec_neurons[i + 1])
        params["decoder"].append((bn, w, b))

    return params


# ---------------------------------------------------------------------------
# Pure-JAX reference (unfolded BN) for numerical verification
# ---------------------------------------------------------------------------
def ref_forward(x, params, eps):
    def bn(h, p):
        gamma, beta, rmean, rvar = p
        return (h - rmean) / jnp.sqrt(rvar + BN_EPS) * gamma + beta

    h = x
    for (bnp, w, b) in params["encoder"]:
        h = jnp.tanh(bn(h, bnp) @ w + b)
    wm, bm = params["mean"]
    wv, bv = params["logvar"]
    mean = h @ wm + bm
    logvar = h @ wv + bv
    z = mean + logvar * eps
    d = z
    dec = params["decoder"]
    for i, (bnp, w, b) in enumerate(dec):
        d = bn(d, bnp) @ w + b
        if i != len(dec) - 1:
            d = jnp.tanh(d)
    return d, mean, logvar


# ---------------------------------------------------------------------------
if __name__ == "__main__":
    B = 8
    INPUT_F = 32
    HIDDEN = [32, 16]
    LATENT = 8

    key = jax.random.PRNGKey(0)
    kp, kx, ke = jax.random.split(key, 3)

    params = build_params(kp, INPUT_F, LATENT, HIDDEN)
    x = jax.random.normal(kx, (B, INPUT_F), jnp.float32)
    # epsilon = torch.randn_like(logvar): generated host-side with jax.random
    eps = jax.random.normal(ke, (B, LATENT), jnp.float32)

    # One-time parameter prep: fold eval-mode BN, pad to lane-dense layout, pack heads.
    packed = pack_params(params)

    fwd = jax.jit(functools.partial(vae_forward,
                                    input_features=INPUT_F,
                                    latent_features=LATENT))
    recon, mean, logvar = fwd(x, eps, packed)
    jax.block_until_ready((recon, mean, logvar))

    r_recon, r_mean, r_logvar = ref_forward(x, params, eps)
    assert recon.shape == (B, INPUT_F)
    assert mean.shape == (B, LATENT) and logvar.shape == (B, LATENT)
    assert jnp.allclose(recon, r_recon, atol=1e-4, rtol=1e-4)
    assert jnp.allclose(mean, r_mean, atol=1e-4, rtol=1e-4)
    assert jnp.allclose(logvar, r_logvar, atol=1e-4, rtol=1e-4)

    # TODO(synk): training-mode Dropout / batch-statistics BatchNorm are stochastic /
    # batch-dependent; only eval-mode forward semantics are implemented (BN folding is
    # exact only with running statistics).
    print("KERNEL_OK")
</pallas_src>

<mosaic_0001>
module attributes {stable_mosaic.version = 11 : i64} {
  func.func @_vae_fused_kernel(%arg0: i32, %arg1: memref<8x128xf32, #tpu.memory_space<vmem>>, %arg2: memref<8x128xf32, #tpu.memory_space<vmem>>, %arg3: memref<128x128xf32, #tpu.memory_space<vmem>>, %arg4: memref<1x128xf32, #tpu.memory_space<vmem>>, %arg5: memref<128x128xf32, #tpu.memory_space<vmem>>, %arg6: memref<1x128xf32, #tpu.memory_space<vmem>>, %arg7: memref<128x256xf32, #tpu.memory_space<vmem>>, %arg8: memref<1x256xf32, #tpu.memory_space<vmem>>, %arg9: memref<128x128xf32, #tpu.memory_space<vmem>>, %arg10: memref<1x128xf32, #tpu.memory_space<vmem>>, %arg11: memref<128x128xf32, #tpu.memory_space<vmem>>, %arg12: memref<1x128xf32, #tpu.memory_space<vmem>>, %arg13: memref<128x128xf32, #tpu.memory_space<vmem>>, %arg14: memref<1x128xf32, #tpu.memory_space<vmem>>, %arg15: memref<8x128xf32, #tpu.memory_space<vmem>>, %arg16: memref<8x128xf32, #tpu.memory_space<vmem>>, %arg17: memref<8x128xf32, #tpu.memory_space<vmem>>) attributes {dimension_semantics = [#tpu.dimension_semantics<parallel>], iteration_bounds = array<i64: 1>, scalar_prefetch = 0 : i64, scratch_operands = 0 : i64, tpu.core_type = #tpu.core_type<tc>, window_params = [{transform_indices = @transform_0, window_bounds = array<i64: 8, 128>}, {transform_indices = @transform_1, window_bounds = array<i64: 8, 128>}, {pipeline_mode = #tpu.pipeline_mode<synchronous>, transform_indices = @transform_2, window_bounds = array<i64: 128, 128>}, {pipeline_mode = #tpu.pipeline_mode<synchronous>, transform_indices = @transform_3, window_bounds = array<i64: 1, 128>}, {pipeline_mode = #tpu.pipeline_mode<synchronous>, transform_indices = @transform_4, window_bounds = array<i64: 128, 128>}, {pipeline_mode = #tpu.pipeline_mode<synchronous>, transform_indices = @transform_5, window_bounds = array<i64: 1, 128>}, {pipeline_mode = #tpu.pipeline_mode<synchronous>, transform_indices = @transform_6, window_bounds = array<i64: 128, 256>}, {pipeline_mode = #tpu.pipeline_mode<synchronous>, transform_indices = @transform_7, window_bounds = array<i64: 1, 256>}, {pipeline_mode = #tpu.pipeline_mode<synchronous>, transform_indices = @transform_8, window_bounds = array<i64: 128, 128>}, {pipeline_mode = #tpu.pipeline_mode<synchronous>, transform_indices = @transform_9, window_bounds = array<i64: 1, 128>}, {pipeline_mode = #tpu.pipeline_mode<synchronous>, transform_indices = @transform_10, window_bounds = array<i64: 128, 128>}, {pipeline_mode = #tpu.pipeline_mode<synchronous>, transform_indices = @transform_11, window_bounds = array<i64: 1, 128>}, {pipeline_mode = #tpu.pipeline_mode<synchronous>, transform_indices = @transform_12, window_bounds = array<i64: 128, 128>}, {pipeline_mode = #tpu.pipeline_mode<synchronous>, transform_indices = @transform_13, window_bounds = array<i64: 1, 128>}, {transform_indices = @transform_14, window_bounds = array<i64: 8, 128>}, {transform_indices = @transform_15, window_bounds = array<i64: 8, 128>}, {transform_indices = @transform_16, window_bounds = array<i64: 8, 128>}]} {
    %c0 = arith.constant 0 : index
    %c0_0 = arith.constant 0 : index
    %0 = vector.load %arg1[%c0, %c0_0] : memref<8x128xf32, #tpu.memory_space<vmem>>, vector<8x128xf32>
    %c0_1 = arith.constant 0 : index
    %c0_2 = arith.constant 0 : index
    %1 = vector.load %arg3[%c0_1, %c0_2] : memref<128x128xf32, #tpu.memory_space<vmem>>, vector<128x128xf32>
    %cst = arith.constant dense<0.000000e+00> : vector<8x128xf32>
    %2 = tpu.matmul %0, %1, %cst {dimension_numbers = #tpu.dot_dimension_numbers<[1], [0], [0], [1], [0, 0, 1, 1], [], []>} : vector<8x128xf32>, vector<128x128xf32>, vector<8x128xf32> -> vector<8x128xf32>
    %c0_3 = arith.constant 0 : index
    %c0_4 = arith.constant 0 : index
    %3 = vector.load %arg4[%c0_3, %c0_4] : memref<1x128xf32, #tpu.memory_space<vmem>>, vector<1x128xf32>
    %4 = vector.broadcast %3 : vector<1x128xf32> to vector<8x128xf32>
    %5 = arith.addf %2, %4 : vector<8x128xf32>
    %6 = math.tanh %5 : vector<8x128xf32>
    %c0_5 = arith.constant 0 : index
    %c0_6 = arith.constant 0 : index
    %7 = vector.load %arg5[%c0_5, %c0_6] : memref<128x128xf32, #tpu.memory_space<vmem>>, vector<128x128xf32>
    %cst_7 = arith.constant dense<0.000000e+00> : vector<8x128xf32>
    %8 = tpu.matmul %6, %7, %cst_7 {dimension_numbers = #tpu.dot_dimension_numbers<[1], [0], [0], [1], [0, 0, 1, 1], [], []>} : vector<8x128xf32>, vector<128x128xf32>, vector<8x128xf32> -> vector<8x128xf32>
    %c0_8 = arith.constant 0 : index
    %c0_9 = arith.constant 0 : index
    %9 = vector.load %arg6[%c0_8, %c0_9] : memref<1x128xf32, #tpu.memory_space<vmem>>, vector<1x128xf32>
    %10 = vector.broadcast %9 : vector<1x128xf32> to vector<8x128xf32>
    %11 = arith.addf %8, %10 : vector<8x128xf32>
    %12 = math.tanh %11 : vector<8x128xf32>
    %c0_10 = arith.constant 0 : index
    %c0_11 = arith.constant 0 : index
    %13 = vector.load %arg7[%c0_10, %c0_11] : memref<128x256xf32, #tpu.memory_space<vmem>>, vector<128x256xf32>
    %cst_12 = arith.constant dense<0.000000e+00> : vector<8x256xf32>
    %14 = tpu.matmul %12, %13, %cst_12 {dimension_numbers = #tpu.dot_dimension_numbers<[1], [0], [0], [1], [0, 0, 1, 1], [], []>} : vector<8x128xf32>, vector<128x256xf32>, vector<8x256xf32> -> vector<8x256xf32>
    %c0_13 = arith.constant 0 : index
    %c0_14 = arith.constant 0 : index
    %15 = vector.load %arg8[%c0_13, %c0_14] : memref<1x256xf32, #tpu.memory_space<vmem>>, vector<1x256xf32>
    %16 = vector.broadcast %15 : vector<1x256xf32> to vector<8x256xf32>
    %17 = arith.addf %14, %16 : vector<8x256xf32>
    %18 = vector.extract_strided_slice %17 {offsets = [0, 0], sizes = [8, 128], strides = [1, 1]} : vector<8x256xf32> to vector<8x128xf32>
    %19 = vector.extract_strided_slice %17 {offsets = [0, 128], sizes = [8, 128], strides = [1, 1]} : vector<8x256xf32> to vector<8x128xf32>
    %c0_15 = arith.constant 0 : index
    %c0_16 = arith.constant 0 : index
    %20 = vector.load %arg2[%c0_15, %c0_16] : memref<8x128xf32, #tpu.memory_space<vmem>>, vector<8x128xf32>
    %21 = arith.mulf %19, %20 : vector<8x128xf32>
    %22 = arith.addf %18, %21 : vector<8x128xf32>
    %c0_17 = arith.constant 0 : index
    %c0_18 = arith.constant 0 : index
    %23 = vector.load %arg16[%c0_17, %c0_18] : memref<8x128xf32, #tpu.memory_space<vmem>>, vector<8x128xf32>
    tpu.vector_store %arg16[%c0_17, %c0_18], %18 {strides = array<i32>} : memref<8x128xf32, #tpu.memory_space<vmem>>, vector<8x128xf32>,
    %c0_19 = arith.constant 0 : index
    %c0_20 = arith.constant 0 : index
    %24 = vector.load %arg17[%c0_19, %c0_20] : memref<8x128xf32, #tpu.memory_space<vmem>>, vector<8x128xf32>
    tpu.vector_store %arg17[%c0_19, %c0_20], %19 {strides = array<i32>} : memref<8x128xf32, #tpu.memory_space<vmem>>, vector<8x128xf32>,
    %c0_21 = arith.constant 0 : index
    %c0_22 = arith.constant 0 : index
    %25 = vector.load %arg9[%c0_21, %c0_22] : memref<128x128xf32, #tpu.memory_space<vmem>>, vector<128x128xf32>
    %cst_23 = arith.constant dense<0.000000e+00> : vector<8x128xf32>
    %26 = tpu.matmul %22, %25, %cst_23 {dimension_numbers = #tpu.dot_dimension_numbers<[1], [0], [0], [1], [0, 0, 1, 1], [], []>} : vector<8x128xf32>, vector<128x128xf32>, vector<8x128xf32> -> vector<8x128xf32>
    %c0_24 = arith.constant 0 : index
    %c0_25 = arith.constant 0 : index
    %27 = vector.load %arg10[%c0_24, %c0_25] : memref<1x128xf32, #tpu.memory_space<vmem>>, vector<1x128xf32>
    %28 = vector.broadcast %27 : vector<1x128xf32> to vector<8x128xf32>
    %29 = arith.addf %26, %28 : vector<8x128xf32>
    %30 = math.tanh %29 : vector<8x128xf32>
    %c0_26 = arith.constant 0 : index
    %c0_27 = arith.constant 0 : index
    %31 = vector.load %arg11[%c0_26, %c0_27] : memref<128x128xf32, #tpu.memory_space<vmem>>, vector<128x128xf32>
    %cst_28 = arith.constant dense<0.000000e+00> : vector<8x128xf32>
    %32 = tpu.matmul %30, %31, %cst_28 {dimension_numbers = #tpu.dot_dimension_numbers<[1], [0], [0], [1], [0, 0, 1, 1], [], []>} : vector<8x128xf32>, vector<128x128xf32>, vector<8x128xf32> -> vector<8x128xf32>
    %c0_29 = arith.constant 0 : index
    %c0_30 = arith.constant 0 : index
    %33 = vector.load %arg12[%c0_29, %c0_30] : memref<1x128xf32, #tpu.memory_space<vmem>>, vector<1x128xf32>
    %34 = vector.broadcast %33 : vector<1x128xf32> to vector<8x128xf32>
    %35 = arith.addf %32, %34 : vector<8x128xf32>
    %36 = math.tanh %35 : vector<8x128xf32>
    %c0_31 = arith.constant 0 : index
    %c0_32 = arith.constant 0 : index
    %37 = vector.load %arg13[%c0_31, %c0_32] : memref<128x128xf32, #tpu.memory_space<vmem>>, vector<128x128xf32>
    %cst_33 = arith.constant dense<0.000000e+00> : vector<8x128xf32>
    %38 = tpu.matmul %36, %37, %cst_33 {dimension_numbers = #tpu.dot_dimension_numbers<[1], [0], [0], [1], [0, 0, 1, 1], [], []>} : vector<8x128xf32>, vector<128x128xf32>, vector<8x128xf32> -> vector<8x128xf32>
    %c0_34 = arith.constant 0 : index
    %c0_35 = arith.constant 0 : index
    %39 = vector.load %arg14[%c0_34, %c0_35] : memref<1x128xf32, #tpu.memory_space<vmem>>, vector<1x128xf32>
    %40 = vector.broadcast %39 : vector<1x128xf32> to vector<8x128xf32>
    %41 = arith.addf %38, %40 : vector<8x128xf32>
    %c0_36 = arith.constant 0 : index
    %c0_37 = arith.constant 0 : index
    %42 = vector.load %arg15[%c0_36, %c0_37] : memref<8x128xf32, #tpu.memory_space<vmem>>, vector<8x128xf32>
    tpu.vector_store %arg15[%c0_36, %c0_37], %41 {strides = array<i32>} : memref<8x128xf32, #tpu.memory_space<vmem>>, vector<8x128xf32>,
    return
  }
  func.func @transform_0(%arg0: i32) -> (i32, i32) {
    %c0_i32 = arith.constant 0 : i32
    %c0_i32_0 = arith.constant 0 : i32
    return %arg0, %c0_i32 : i32, i32
  }
  func.func @transform_1(%arg0: i32) -> (i32, i32) {
    %c0_i32 = arith.constant 0 : i32
    %c0_i32_0 = arith.constant 0 : i32
    return %arg0, %c0_i32 : i32, i32
  }
  func.func @transform_2(%arg0: i32) -> (i32, i32) {
    %c0_i32 = arith.constant 0 : i32
    %c0_i32_0 = arith.constant 0 : i32
    %c0_i32_1 = arith.constant 0 : i32
    return %c0_i32, %c0_i32_0 : i32, i32
  }
  func.func @transform_3(%arg0: i32) -> (i32, i32) {
    %c0_i32 = arith.constant 0 : i32
    %c0_i32_0 = arith.constant 0 : i32
    %c0_i32_1 = arith.constant 0 : i32
    return %c0_i32, %c0_i32_0 : i32, i32
  }
  func.func @transform_4(%arg0: i32) -> (i32, i32) {
    %c0_i32 = arith.constant 0 : i32
    %c0_i32_0 = arith.constant 0 : i32
    %c0_i32_1 = arith.constant 0 : i32
    return %c0_i32, %c0_i32_0 : i32, i32
  }
  func.func @transform_5(%arg0: i32) -> (i32, i32) {
    %c0_i32 = arith.constant 0 : i32
    %c0_i32_0 = arith.constant 0 : i32
    %c0_i32_1 = arith.constant 0 : i32
    return %c0_i32, %c0_i32_0 : i32, i32
  }
  func.func @transform_6(%arg0: i32) -> (i32, i32) {
    %c0_i32 = arith.constant 0 : i32
    %c0_i32_0 = arith.constant 0 : i32
    %c0_i32_1 = arith.constant 0 : i32
    return %c0_i32, %c0_i32_0 : i32, i32
  }
  func.func @transform_7(%arg0: i32) -> (i32, i32) {
    %c0_i32 = arith.constant 0 : i32
    %c0_i32_0 = arith.constant 0 : i32
    %c0_i32_1 = arith.constant 0 : i32
    return %c0_i32, %c0_i32_0 : i32, i32
  }
  func.func @transform_8(%arg0: i32) -> (i32, i32) {
    %c0_i32 = arith.constant 0 : i32
    %c0_i32_0 = arith.constant 0 : i32
    %c0_i32_1 = arith.constant 0 : i32
    return %c0_i32, %c0_i32_0 : i32, i32
  }
  func.func @transform_9(%arg0: i32) -> (i32, i32) {
    %c0_i32 = arith.constant 0 : i32
    %c0_i32_0 = arith.constant 0 : i32
    %c0_i32_1 = arith.constant 0 : i32
    return %c0_i32, %c0_i32_0 : i32, i32
  }
  func.func @transform_10(%arg0: i32) -> (i32, i32) {
    %c0_i32 = arith.constant 0 : i32
    %c0_i32_0 = arith.constant 0 : i32
    %c0_i32_1 = arith.constant 0 : i32
    return %c0_i32, %c0_i32_0 : i32, i32
  }
  func.func @transform_11(%arg0: i32) -> (i32, i32) {
    %c0_i32 = arith.constant 0 : i32
    %c0_i32_0 = arith.constant 0 : i32
    %c0_i32_1 = arith.constant 0 : i32
    return %c0_i32, %c0_i32_0 : i32, i32
  }
  func.func @transform_12(%arg0: i32) -> (i32, i32) {
    %c0_i32 = arith.constant 0 : i32
    %c0_i32_0 = arith.constant 0 : i32
    %c0_i32_1 = arith.constant 0 : i32
    return %c0_i32, %c0_i32_0 : i32, i32
  }
  func.func @transform_13(%arg0: i32) -> (i32, i32) {
    %c0_i32 = arith.constant 0 : i32
    %c0_i32_0 = arith.constant 0 : i32
    %c0_i32_1 = arith.constant 0 : i32
    return %c0_i32, %c0_i32_0 : i32, i32
  }
  func.func @transform_14(%arg0: i32) -> (i32, i32) {
    %c0_i32 = arith.constant 0 : i32
    %c0_i32_0 = arith.constant 0 : i32
    return %arg0, %c0_i32 : i32, i32
  }
  func.func @transform_15(%arg0: i32) -> (i32, i32) {
    %c0_i32 = arith.constant 0 : i32
    %c0_i32_0 = arith.constant 0 : i32
    return %arg0, %c0_i32 : i32, i32
  }
  func.func @transform_16(%arg0: i32) -> (i32, i32) {
    %c0_i32 = arith.constant 0 : i32
    %c0_i32_0 = arith.constant 0 : i32
    return %arg0, %c0_i32 : i32, i32
  }
}

</mosaic_0001>

<bundles_post_ra>
// kernel: vae_forward.1
= control target key start
LH: loop header
LB: loop body
LE: loop exit
PB: predicated region body
PF: predicated region fallthrough
CT: control target
= control target key end

     0   :  { %s904_s0 = inlined_call_operand.vmem [shape: f32[8,128], index: 0, kind: input, shape index: {}]   ;;  %s905_s1 = inlined_call_operand.vmem [shape: f32[8,128], index: 1, kind: input, shape index: {}]   ;;  %s906_s2 = inlined_call_operand.hbm [shape: f32[128,128], index: 2, kind: input, shape index: {}]   ;;  %s907_s3 = inlined_call_operand.vmem [shape: f32[1,128], index: 3, kind: input, shape index: {}]   ;;  %s908_s4 = inlined_call_operand.hbm [shape: f32[128,128], index: 4, kind: input, shape index: {}]   ;;  %s909_s5 = inlined_call_operand.vmem [shape: f32[1,128], index: 5, kind: input, shape index: {}]   ;;  %s910_s6 = inlined_call_operand.hbm [shape: f32[128,256], index: 6, kind: input, shape index: {}]   ;;  %s911_s7 = inlined_call_operand.vmem [shape: f32[1,256], index: 7, kind: input, shape index: {}]   ;;  %s912_s8 = inlined_call_operand.hbm [shape: f32[128,128], index: 8, kind: input, shape index: {}]   ;;  %s913_s9 = inlined_call_operand.vmem [shape: f32[1,128], index: 9, kind: input, shape index: {}]   ;;  %s914_s10 = inlined_call_operand.hbm [shape: f32[128,128], index: 10, kind: input, shape index: {}]   ;;  %s915_s11 = inlined_call_operand.vmem [shape: f32[1,128], index: 11, kind: input, shape index: {}]   ;;  %s916_s12 = inlined_call_operand.hbm [shape: f32[128,128], index: 12, kind: input, shape index: {}]   ;;  %s917_s13 = inlined_call_operand.vmem [shape: f32[1,128], index: 13, kind: input, shape index: {}]   ;;  %s918_s14 = inlined_call_operand.hbm [shape: f32[8,128], index: 14, kind: output, shape index: {0}]   ;;  %s919_s15 = inlined_call_operand.hbm [shape: f32[8,128], index: 15, kind: output, shape index: {1}]   ;;  %s920_s16 = inlined_call_operand.hbm [shape: f32[8,128], index: 16, kind: output, shape index: {2}]  }
   0x1   :  { %921 = sst [smem:[#allocation23_spill]] %s904_s0 }
   0x2   :  { %22 = vsyncpa [#allocation3], 0 }
   0x3   :  { %23 = vsyncpa [#allocation6], 0 }
   0x4   :  { %24 = vsyncpa [#allocation9], 0 }
   0x5   :  { %25 = vsyncpa [#allocation12], 0 }
   0x6   :  { %26 = vsyncpa [#allocation4], 0 }
   0x7   :  { %27 = vsyncpa [#allocation15], 0  ;;  %s51_s23 = sshll.u32 %s908_s4, 4  ;;  %s740_s24 = smov [#allocation5]   ;;  %s52_s23 = int_to_ptr.hbm [resolvable:$true] %s51_s23 }
   0x8   :  { %s53_s25 = sshll.u32 %s740_s24, 4  ;;  %s81_s28 = sshll.u32 %s912_s8, 4  ;;  %s54_s25 = int_to_ptr.vmem [resolvable:$true] %s53_s25  ;;  %s82_s28 = int_to_ptr.hbm [resolvable:$true] %s81_s28 }
   0x9   :  { %s741_s29 = smov 128   ;;  %s742_s30 = smov 8  }
   0xa   :  { %59 = dma.hbm_to_vmem [thread:$0]  %s52_s23, 2048, %s54_s25, [#allocation6], %s741_s29, %s741_s29, %s742_s30  }
   0xb   :  { %s743_s0 = smov [#allocation8]   ;;  %s36_s4 = sshll.u32 %s906_s2, 4  ;;  %s37_s4 = int_to_ptr.hbm [resolvable:$true] %s36_s4 }
   0xc   :  { %s83_s17 = sshll.u32 %s743_s0, 4  ;;  %s66_s21 = sshll.u32 %s910_s6, 4  ;;  %s84_s17 = int_to_ptr.vmem [resolvable:$true] %s83_s17  ;;  %s67_s21 = int_to_ptr.hbm [resolvable:$true] %s66_s21 }
   0xd   :  { %89 = dma.hbm_to_vmem [thread:$0]  %s82_s28, 2048, %s84_s17, [#allocation9], %s741_s29, %s741_s29, %s742_s30  }
   0xe   :  { %s744_s22 = smov [#allocation2]   ;;  %s745_s23 = smov [#allocation7]  }
   0xf   :  { %s38_s24 = sshll.u32 %s744_s22, 4  ;;  %s68_s2 = sshll.u32 %s745_s23, 4  ;;  %s39_s24 = int_to_ptr.vmem [resolvable:$true] %s38_s24  ;;  %s69_s2 = int_to_ptr.vmem [resolvable:$true] %s68_s2 }
  0x10   :  { %44 = dma.hbm_to_vmem [thread:$0]  %s37_s4, 2048, %s39_s24, [#allocation3], %s741_s29, %s741_s29, %s742_s30  }
  0x11   :  { %s746_s25 = smov 256   ;;  %s747_s26 = smov 16  }
  0x12   :  { %74 = dma.hbm_to_vmem [thread:$0]  %s67_s21, 4096, %s69_s2, [#allocation6], %s746_s25, %s746_s25, %s747_s26  }
  0x13   :  { %s96_s0 = sshll.u32 %s914_s10, 4  ;;  %s748_s6 = smov [#allocation10]   ;;  %s97_s0 = int_to_ptr.hbm [resolvable:$true] %s96_s0 }
  0x14   :  { %s98_s17 = sshll.u32 %s748_s6, 4  ;;  %s111_s8 = sshll.u32 %s916_s12, 4  ;;  %s99_s17 = int_to_ptr.vmem [resolvable:$true] %s98_s17  ;;  %s112_s8 = int_to_ptr.hbm [resolvable:$true] %s111_s8 }
  0x15   :  { %104 = dma.hbm_to_vmem [thread:$0]  %s97_s0, 2048, %s99_s17, [#allocation9], %s741_s29, %s741_s29, %s742_s30  }
  0x16   :  { %s749_s4 = smov [#allocation11]  }
  0x17   :  { %s113_s20 = sshll.u32 %s749_s4, 4  ;;  %s114_s20 = int_to_ptr.vmem [resolvable:$true] %s113_s20 }
  0x18   :  { %119 = dma.hbm_to_vmem [thread:$0]  %s112_s8, 2048, %s114_s20, [#allocation12], %s741_s29, %s741_s29, %s742_s30  }
  0x19   :  { %728 = dma.done.wait [#allocation3], 2048  }
  0x1a   :  { %729 = vsyncadd [#allocation3], 4294965248 }
  0x1b   :  { %730 = dma.done.wait [#allocation6], 6144  }
  0x1c   :  { %731 = vsyncadd [#allocation6], 4294961152 }
  0x1d   :  { %732 = dma.done.wait [#allocation9], 4096  }
  0x1e   :  { %733 = vsyncadd [#allocation9], 4294963200 }
  0x1f   :  { %734 = dma.done.wait [#allocation12], 2048  }
  0x20   :  { %735 = vsyncadd [#allocation12], 4294965248  ;;  %v162_v0 = vld [vmem:[#allocation2 + $0x78] sm:$0xff]  ;;  %v161_v1 = vld [vmem:[#allocation2 + $0x70] sm:$0xff]  ;;  %s922_s29 = sld [smem:[#allocation23_spill]]  ;;  %s453_s6 = sshll.u32 %s919_s15, 4  ;;  %s454_s6 = int_to_ptr.hbm [resolvable:$true] %s453_s6 }
  0x21   :  { %167 = vmatpush.msra.mxu0 %v162_v0  ;;  %v160_v2 = vld [vmem:[#allocation2 + $0x68] sm:$0xff]  ;;  %v159_v3 = vld [vmem:[#allocation2 + $0x60] sm:$0xff]  ;;  %v203_v4 = vld [vmem:[#allocation5 + $0x78] sm:$0xff]  ;;  %s751_s17 = smov [#allocation16]   ;;  %s752_s10 = smov [#allocation13]  }
  0x22   :  { %v158_v5 = vld [vmem:[#allocation2 + $0x58] sm:$0xff]  ;;  %208 = vmatpush.msra.mxu1 %v203_v4  ;;  %v202_v6 = vld [vmem:[#allocation5 + $0x70] sm:$0xff]  ;;  %v201_v7 = vld [vmem:[#allocation5 + $0x68] sm:$0xff]  ;;  %s462_s18 = sshll.u32 %s751_s17, 4  ;;  %s440_s12 = sshll.u32 %s752_s10, 4  ;;  %s463_s18 = int_to_ptr.vmem [resolvable:$true] %s462_s18  ;;  %s441_s12 = int_to_ptr.vmem [resolvable:$true] %s440_s12 }
  0x23   :  { %168 = vmatpush.msra.mxu0 %v161_v1  ;;  %v157_v8 = vld [vmem:[#allocation2 + $0x50] sm:$0xff]  ;;  %v156_v9 = vld [vmem:[#allocation2 + $0x48] sm:$0xff]  ;;  %v200_v10 = vld [vmem:[#allocation5 + $0x60] sm:$0xff]  ;;  %s442_s30 = sshll.u32 %s918_s14, 4  ;;  %s443_s30 = int_to_ptr.hbm [resolvable:$true] %s442_s30 }
  0x24   :  { %209 = vmatpush.msra.mxu1 %v202_v6  ;;  %v199_v11 = vld [vmem:[#allocation5 + $0x58] sm:$0xff]  ;;  %v155_v12 = vld [vmem:[#allocation2 + $0x40] sm:$0xff]  ;;  %v198_v13 = vld [vmem:[#allocation5 + $0x50] sm:$0xff] }
  0x25   :  { %169 = vmatpush.msra.mxu0 %v160_v2  ;;  %v154_v14 = vld [vmem:[#allocation2 + $0x38] sm:$0xff]  ;;  %v197_v15 = vld [vmem:[#allocation5 + $0x48] sm:$0xff]  ;;  %v153_v16 = vld [vmem:[#allocation2 + $0x30] sm:$0xff] }
  0x26   :  { %210 = vmatpush.msra.mxu1 %v201_v7  ;;  %v196_v17 = vld [vmem:[#allocation5 + $0x40] sm:$0xff]  ;;  %v152_v18 = vld [vmem:[#allocation2 + $0x28] sm:$0xff]  ;;  %v195_v19 = vld [vmem:[#allocation5 + $0x38] sm:$0xff] }
  0x27   :  { %170 = vmatpush.msra.mxu0 %v159_v3  ;;  %v151_v20 = vld [vmem:[#allocation2 + $0x20] sm:$0xff]  ;;  %v194_v21 = vld [vmem:[#allocation5 + $0x30] sm:$0xff]  ;;  %v150_v22 = vld [vmem:[#allocation2 + $0x18] sm:$0xff] }
  0x28   :  { %211 = vmatpush.msra.mxu1 %v200_v10  ;;  %v193_v23 = vld [vmem:[#allocation5 + $0x28] sm:$0xff]  ;;  %v149_v24 = vld [vmem:[#allocation2 + $0x10] sm:$0xff]  ;;  %v147_v26 = vld [vmem:[#allocation2] sm:$0xff] }
  0x29   :  { %171 = vmatpush.msra.mxu0 %v158_v5  ;;  %v148_v25 = vld [vmem:[#allocation2 + $0x8] sm:$0xff]  ;;  %v146_v27 = vld [vmem:[%s922_s29] sm:$0xff]  ;;  %v191_v29 = vld [vmem:[#allocation5 + $0x18] sm:$0xff] }
  0x2a   :  { %212 = vmatpush.msra.mxu1 %v199_v11  ;;  %v192_v28 = vld [vmem:[#allocation5 + $0x20] sm:$0xff]  ;;  %v190_v30 = vld [vmem:[#allocation5 + $0x10] sm:$0xff]  ;;  %v189_v31 = vld [vmem:[#allocation5 + $0x8] sm:$0xff] }
  0x2b   :  { %172 = vmatpush.msra.mxu0 %v157_v8  ;;  %v188_v32 = vld [vmem:[#allocation5] sm:$0xff]  ;;  %v259_v33 = vld [vmem:[#allocation7 + $0xf0] sm:$0xff]  ;;  %v260_v34 = vld [vmem:[#allocation7 + $0xf8] sm:$0xff] }
  0x2c   :  { %213 = vmatpush.msra.mxu1 %v198_v13  ;;  %v257_v35 = vld [vmem:[#allocation7 + $0xe0] sm:$0xff]  ;;  %267 = vmatpush.msra.mxu2 %v259_v33  ;;  %v258_v36 = vld [vmem:[#allocation7 + $0xe8] sm:$0xff]  ;;  %v255_v37 = vld [vmem:[#allocation7 + $0xd0] sm:$0xff] }
  0x2d   :  { %173 = vmatpush.msra.mxu0 %v156_v9  ;;  %287 = vmatpush.msra.mxu3 %v260_v34  ;;  %v256_v38 = vld [vmem:[#allocation7 + $0xd8] sm:$0xff]  ;;  %v253_v39 = vld [vmem:[#allocation7 + $0xc0] sm:$0xff]  ;;  %v254_v40 = vld [vmem:[#allocation7 + $0xc8] sm:$0xff] }
  0x2e   :  { %214 = vmatpush.msra.mxu1 %v197_v15  ;;  %268 = vmatpush.msra.mxu2 %v257_v35  ;;  %v251_v41 = vld [vmem:[#allocation7 + $0xb0] sm:$0xff]  ;;  %v252_v42 = vld [vmem:[#allocation7 + $0xb8] sm:$0xff]  ;;  %v249_v43 = vld [vmem:[#allocation7 + $0xa0] sm:$0xff] }
  0x2f   :  { %174 = vmatpush.msra.mxu0 %v155_v12  ;;  %288 = vmatpush.msra.mxu3 %v258_v36  ;;  %v250_v44 = vld [vmem:[#allocation7 + $0xa8] sm:$0xff]  ;;  %v247_v45 = vld [vmem:[#allocation7 + $0x90] sm:$0xff]  ;;  %v248_v46 = vld [vmem:[#allocation7 + $0x98] sm:$0xff] }
  0x30   :  { %215 = vmatpush.msra.mxu1 %v196_v17  ;;  %269 = vmatpush.msra.mxu2 %v255_v37  ;;  %v245_v47 = vld [vmem:[#allocation7 + $0x80] sm:$0xff]  ;;  %v246_v48 = vld [vmem:[#allocation7 + $0x88] sm:$0xff]  ;;  %v243_v49 = vld [vmem:[#allocation7 + $0x70] sm:$0xff] }
  0x31   :  { %175 = vmatpush.msra.mxu0 %v154_v14  ;;  %289 = vmatpush.msra.mxu3 %v256_v38  ;;  %v244_v50 = vld [vmem:[#allocation7 + $0x78] sm:$0xff]  ;;  %v241_v51 = vld [vmem:[#allocation7 + $0x60] sm:$0xff]  ;;  %v242_v52 = vld [vmem:[#allocation7 + $0x68] sm:$0xff] }
  0x32   :  { %216 = vmatpush.msra.mxu1 %v195_v19  ;;  %270 = vmatpush.msra.mxu2 %v253_v39  ;;  %v239_v53 = vld [vmem:[#allocation7 + $0x50] sm:$0xff]  ;;  %v240_v54 = vld [vmem:[#allocation7 + $0x58] sm:$0xff]  ;;  %v499_v55 = vld [vmem:[%s907_s3] ss:$0 sm:$0xff] }
  0x33   :  { %176 = vmatpush.msra.mxu0 %v153_v16  ;;  %290 = vmatpush.msra.mxu3 %v254_v40  ;;  %v237_v59 = vld [vmem:[#allocation7 + $0x40] sm:$0xff]  ;;  %v238_v60 = vld [vmem:[#allocation7 + $0x48] sm:$0xff]  ;;  %v235_v61 = vld [vmem:[#allocation7 + $0x30] sm:$0xff] }
  0x34   :  { %217 = vmatpush.msra.mxu1 %v194_v21  ;;  %271 = vmatpush.msra.mxu2 %v251_v41  ;;  %v236_v62 = vld [vmem:[#allocation7 + $0x38] sm:$0xff]  ;;  %v233_v63 = vld [vmem:[#allocation7 + $0x20] sm:$0xff]  ;;  %v234_v0 = vld [vmem:[#allocation7 + $0x28] sm:$0xff] }
  0x35   :  { %177 = vmatpush.msra.mxu0 %v152_v18  ;;  %291 = vmatpush.msra.mxu3 %v252_v42  ;;  %v231_v1 = vld [vmem:[#allocation7 + $0x10] sm:$0xff]  ;;  %v232_v2 = vld [vmem:[#allocation7 + $0x18] sm:$0xff]  ;;  %v229_v3 = vld [vmem:[#allocation7] sm:$0xff] }
  0x36   :  { %218 = vmatpush.msra.mxu1 %v193_v23  ;;  %272 = vmatpush.msra.mxu2 %v249_v43  ;;  %v230_v4 = vld [vmem:[#allocation7 + $0x8] sm:$0xff]  ;;  %v327_v5 = vld [vmem:[#allocation8 + $0x78] sm:$0xff]  ;;  %v326_v6 = vld [vmem:[#allocation8 + $0x70] sm:$0xff] }
  0x37   :  { %178 = vmatpush.msra.mxu0 %v151_v20  ;;  %292 = vmatpush.msra.mxu3 %v250_v44  ;;  %v325_v7 = vld [vmem:[#allocation8 + $0x68] sm:$0xff]  ;;  %v324_v8 = vld [vmem:[#allocation8 + $0x60] sm:$0xff]  ;;  %v323_v9 = vld [vmem:[#allocation8 + $0x58] sm:$0xff] }
  0x38   :  { %219 = vmatpush.msra.mxu1 %v192_v28  ;;  %273 = vmatpush.msra.mxu2 %v247_v45  ;;  %v322_v10 = vld [vmem:[#allocation8 + $0x50] sm:$0xff]  ;;  %v321_v11 = vld [vmem:[#allocation8 + $0x48] sm:$0xff]  ;;  %v320_v12 = vld [vmem:[#allocation8 + $0x40] sm:$0xff] }
  0x39   :  { %179 = vmatpush.msra.mxu0 %v150_v22  ;;  %293 = vmatpush.msra.mxu3 %v248_v46  ;;  %v319_v13 = vld [vmem:[#allocation8 + $0x38] sm:$0xff]  ;;  %v318_v14 = vld [vmem:[#allocation8 + $0x30] sm:$0xff]  ;;  %v317_v15 = vld [vmem:[#allocation8 + $0x28] sm:$0xff] }
  0x3a   :  { %220 = vmatpush.msra.mxu1 %v191_v29  ;;  %274 = vmatpush.msra.mxu2 %v245_v47  ;;  %v500_v16 = vld [vmem:[%s909_s5] ss:$0 sm:$0xff]  ;;  %v315_v21 = vld [vmem:[#allocation8 + $0x18] sm:$0xff]  ;;  %v314_v22 = vld [vmem:[#allocation8 + $0x10] sm:$0xff] }
  0x3b   :  { %180 = vmatpush.msra.mxu0 %v149_v24  ;;  %294 = vmatpush.msra.mxu3 %v246_v48  ;;  %v316_v17 = vld [vmem:[#allocation8 + $0x20] sm:$0xff]  ;;  %v313_v23 = vld [vmem:[#allocation8 + $0x8] sm:$0xff]  ;;  %v364_v29 = vld [vmem:[#allocation10 + $0x58] sm:$0xff] }
  0x3c   :  { %221 = vmatpush.msra.mxu1 %v190_v30  ;;  %275 = vmatpush.msra.mxu2 %v243_v49  ;;  %v312_v24 = vld [vmem:[#allocation8] sm:$0xff]  ;;  %v363_v30 = vld [vmem:[#allocation10 + $0x50] sm:$0xff]  ;;  %v360_v33 = vld [vmem:[#allocation10 + $0x38] sm:$0xff] }
  0x3d   :  { %181 = vmatpush.msra.mxu0 %v148_v25  ;;  %295 = vmatpush.msra.mxu3 %v244_v50  ;;  %v368_v25 = vld [vmem:[#allocation10 + $0x78] sm:$0xff]  ;;  %v365_v28 = vld [vmem:[#allocation10 + $0x60] sm:$0xff]  ;;  %v359_v34 = vld [vmem:[#allocation10 + $0x30] sm:$0xff] }
  0x3e   :  { %222 = vmatpush.msra.mxu1 %v189_v31  ;;  %276 = vmatpush.msra.mxu2 %v241_v51  ;;  %v362_v31 = vld [vmem:[#allocation10 + $0x48] sm:$0xff]  ;;  %v261_v36 = vld [vmem:[%s911_s7] sm:$0x3]  ;;  %v356_v47 = vld [vmem:[#allocation10 + $0x18] sm:$0xff] }
  0x3f   :  { %182 = vmatpush.msra.mxu0 %v147_v26  ;;  %296 = vmatpush.msra.mxu3 %v242_v52  ;;  %v367_v26 = vld [vmem:[#allocation10 + $0x70] sm:$0xff]  ;;  %v358_v35 = vld [vmem:[#allocation10 + $0x28] sm:$0xff]  ;;  %v263_v37 = vperm.slane %v261_v36, 0  ;;  %v264_v38 = vperm.slane %v261_v36, 1  ;;  %v307_v41 = vld [vmem:[%s905_s1] sm:$0xff] }
  0x40   :  { %183 = vmatmul.f32.vlgmr.msra.gmra.mxu0 %v146_v27  ;;  %223 = vmatpush.msra.mxu1 %v188_v32  ;;  %v366_v27 = vld [vmem:[#allocation10 + $0x68] sm:$0xff]  ;;  %v361_v32 = vld [vmem:[#allocation10 + $0x40] sm:$0xff]  ;;  %v355_v48 = vld [vmem:[#allocation10 + $0x10] sm:$0xff] }
  0x41   :  { %277 = vmatpush.msra.mxu2 %v239_v53  ;;  %297 = vmatpush.msra.mxu3 %v240_v54  ;;  %v357_v46 = vld [vmem:[#allocation10 + $0x20] sm:$0xff]  ;;  %v354_v49 = vld [vmem:[#allocation10 + $0x8] sm:$0xff]  ;;  %v409_v51 = vld [vmem:[#allocation11 + $0x78] sm:$0xff] }
  0x42   :  { %332 = vmatpush.msrb.mxu0 %v327_v5  ;;  %373 = vmatpush.msrb.mxu1 %v368_v25  ;;  %v353_v50 = vld [vmem:[#allocation10] sm:$0xff]  ;;  %v408_v52 = vld [vmem:[#allocation11 + $0x70] sm:$0xff]  ;;  %v407_v53 = vld [vmem:[#allocation11 + $0x68] sm:$0xff] }
  0x43   :  { %278 = vmatpush.msra.mxu2 %v237_v59  ;;  %298 = vmatpush.msra.mxu3 %v238_v60  ;;  %v406_v54 = vld [vmem:[#allocation11 + $0x60] sm:$0xff]  ;;  %v401_v59 = vld [vmem:[#allocation11 + $0x38] sm:$0xff]  ;;  %v400_v60 = vld [vmem:[#allocation11 + $0x30] sm:$0xff] }
  0x44   :  { %333 = vmatpush.msrb.mxu0 %v326_v6  ;;  %374 = vmatpush.msrb.mxu1 %v367_v26  ;;  %v395_v5 = vld [vmem:[#allocation11 + $0x8] sm:$0xff]  ;;  %v394_v6 = vld [vmem:[#allocation11] sm:$0xff] }
  0x45   :  { %279 = vmatpush.msra.mxu2 %v235_v61  ;;  %299 = vmatpush.msra.mxu3 %v236_v62  ;;  %v399_v61 = vld [vmem:[#allocation11 + $0x28] sm:$0xff]  ;;  %v501_v62 = vld [vmem:[%s913_s9] ss:$0 sm:$0xff]  ;;  %s750_s9 = smov [#allocation14]  }
  0x46   :  { %334 = vmatpush.msrb.mxu0 %v325_v7  ;;  %375 = vmatpush.msrb.mxu1 %v366_v27  ;;  %v502_v7 = vld [vmem:[%s915_s11] ss:$0 sm:$0xff]  ;;  %s451_s27 = sshll.u32 %s750_s9, 4  ;;  %s464_s11 = sshll.u32 %s920_s16, 4  ;;  %s452_s27 = int_to_ptr.vmem [resolvable:$true] %s451_s27  ;;  %s465_s11 = int_to_ptr.hbm [resolvable:$true] %s464_s11 }
  0x47   :  { %280 = vmatpush.msra.mxu2 %v233_v63  ;;  %300 = vmatpush.msra.mxu3 %v234_v0 }
  0x48   :  { %335 = vmatpush.msrb.mxu0 %v324_v8  ;;  %376 = vmatpush.msrb.mxu1 %v365_v28 }
  0x49   :  { %281 = vmatpush.msra.mxu2 %v231_v1  ;;  %301 = vmatpush.msra.mxu3 %v232_v2  ;;  %v398_v2 = vld [vmem:[#allocation11 + $0x20] sm:$0xff] }
  0x4a   :  { %336 = vmatpush.msrb.mxu0 %v323_v9  ;;  %377 = vmatpush.msrb.mxu1 %v364_v29 }
  0x4b   :  { %282 = vmatpush.msra.mxu2 %v229_v3  ;;  %302 = vmatpush.msra.mxu3 %v230_v4  ;;  %v397_v3 = vld [vmem:[#allocation11 + $0x18] sm:$0xff]  ;;  %v396_v4 = vld [vmem:[#allocation11 + $0x10] sm:$0xff] }
  0x4c   :  { %337 = vmatpush.msrb.mxu0 %v322_v10  ;;  %378 = vmatpush.msrb.mxu1 %v363_v30 }
  0x4d   :  { %414 = vmatpush.msrb.mxu2 %v409_v51 }
  0x4e   :  { %338 = vmatpush.msrb.mxu0 %v321_v11  ;;  %379 = vmatpush.msrb.mxu1 %v362_v31  ;;  %v503_v11 = vld [vmem:[%s917_s13] ss:$0 sm:$0xff] }
  0x4f   :  { %415 = vmatpush.msrb.mxu2 %v408_v52 }
  0x50   :  { %339 = vmatpush.msrb.mxu0 %v320_v12  ;;  %380 = vmatpush.msrb.mxu1 %v361_v32 }
  0x51   :  { %416 = vmatpush.msrb.mxu2 %v407_v53 }
  0x52   :  { %340 = vmatpush.msrb.mxu0 %v319_v13  ;;  %381 = vmatpush.msrb.mxu1 %v360_v33 }
  0x53   :  { %417 = vmatpush.msrb.mxu2 %v406_v54 }
  0x54   :  { %341 = vmatpush.msrb.mxu0 %v318_v14  ;;  %382 = vmatpush.msrb.mxu1 %v359_v34 }
  0x56   :  { %342 = vmatpush.msrb.mxu0 %v317_v15  ;;  %383 = vmatpush.msrb.mxu1 %v358_v35 }
  0x58   :  { %343 = vmatpush.msrb.mxu0 %v316_v17  ;;  %384 = vmatpush.msrb.mxu1 %v357_v46 }
  0x5a   :  { %344 = vmatpush.msrb.mxu0 %v315_v21  ;;  %385 = vmatpush.msrb.mxu1 %v356_v47 }
  0x5c   :  { %345 = vmatpush.msrb.mxu0 %v314_v22  ;;  %386 = vmatpush.msrb.mxu1 %v355_v48 }
  0x5e   :  { %346 = vmatpush.msrb.mxu0 %v313_v23  ;;  %387 = vmatpush.msrb.mxu1 %v354_v49 }
  0x60   :  { %347 = vmatpush.msrb.mxu0 %v312_v24  ;;  %388 = vmatpush.msrb.mxu1 %v353_v50 }
  0xbd   :  { %v184_v56 = vpop.f32.mrf.mxu0 }
  0xbe   :  { %v185_v57 = vadd.f32 %v499_v55, %v184_v56  ;;  %v405_v55 = vld [vmem:[#allocation11 + $0x58] sm:$0xff]  ;;  %v404_v56 = vld [vmem:[#allocation11 + $0x50] sm:$0xff] }
  0xbf   :  { %418 = vmatpush.msrb.mxu2 %v405_v55 }
  0xc0   :  { %504 = vtanh.f32 %v185_v57  ;;  %v403_v57 = vld [vmem:[#allocation11 + $0x48] sm:$0xff] }
  0xc1   :  { %419 = vmatpush.msrb.mxu2 %v404_v56 }
  0xc3   :  { %420 = vmatpush.msrb.mxu2 %v403_v57 }
  0xc6   :  { %v505_v58 = vpop.eup %504 }
  0xc7   :  { %224 = vmatmul.f32.vlgmr.msra.gmra.mxu1 %v505_v58  ;;  %v402_v58 = vld [vmem:[#allocation11 + $0x40] sm:$0xff] }
  0xc8   :  { %421 = vmatpush.msrb.mxu2 %v402_v58 }
  0xca   :  { %422 = vmatpush.msrb.mxu2 %v401_v59 }
  0xcc   :  { %423 = vmatpush.msrb.mxu2 %v400_v60 }
  0xce   :  { %424 = vmatpush.msrb.mxu2 %v399_v61 }
  0xd0   :  { %425 = vmatpush.msrb.mxu2 %v398_v2 }
  0xd2   :  { %426 = vmatpush.msrb.mxu2 %v397_v3 }
  0xd4   :  { %427 = vmatpush.msrb.mxu2 %v396_v4 }
  0xd6   :  { %428 = vmatpush.msrb.mxu2 %v395_v5 }
  0xd8   :  { %429 = vmatpush.msrb.mxu2 %v394_v6 }
 0x144   :  { %v225_v18 = vpop.f32.mrf.mxu1 }
 0x145   :  { %v226_v19 = vadd.f32 %v500_v16, %v225_v18 }
 0x147   :  { %506 = vtanh.f32 %v226_v19 }
 0x14d   :  { %v507_v20 = vpop.eup %506 }
 0x14e   :  { %283 = vmatmul.f32.vlgmr.msra.gmra.mxu2 %v507_v20  ;;  %303 = vmatmul.f32.vlgmr.msra.gmra.mxu3 %v507_v20 }
 0x1d1   :  { %v284_v39 = vpop.f32.mrf.mxu2  ;;  %v304_v40 = vpop.f32.mrf.mxu3 }
 0x1d2   :  { %v285_v42 = vadd.f32 %v284_v39, %v263_v37  ;;  %v305_v43 = vadd.f32 %v304_v40, %v264_v38 }
 0x1d4   :  { %310 = vst [vmem:[#allocation14] sm:$0xff] %v285_v42  ;;  %v308_v44 = vmul.f32 %v307_v41, %v305_v43 }
 0x1d5   :  { %311 = vst [vmem:[#allocation16] sm:$0xff] %v305_v43  ;;  %456 = dma.vmem_to_hbm [thread:$0]  %s452_s27, 128, %s454_s6, [#allocation15]  }
 0x1d6   :  { %v309_v45 = vadd.f32 %v308_v44, %v285_v42  ;;  %467 = dma.vmem_to_hbm [thread:$0]  %s463_s18, 128, %s465_s11, [#allocation15]  }
 0x1d8   :  { %348 = vmatmul.f32.vlgmr.msrb.gmra.mxu0 %v309_v45 }
 0x255   :  { %v349_v63 = vpop.f32.mrf.mxu0 }
 0x256   :  { %v350_v0 = vadd.f32 %v501_v62, %v349_v63 }
 0x258   :  { %508 = vtanh.f32 %v350_v0 }
 0x25e   :  { %v509_v1 = vpop.eup %508 }
 0x25f   :  { %389 = vmatmul.f32.vlgmr.msrb.gmra.mxu1 %v509_v1 }
 0x2dc   :  { %v390_v8 = vpop.f32.mrf.mxu1 }
 0x2dd   :  { %v391_v9 = vadd.f32 %v502_v7, %v390_v8 }
 0x2df   :  { %510 = vtanh.f32 %v391_v9 }
 0x2e5   :  { %v511_v10 = vpop.eup %510 }
 0x2e6   :  { %430 = vmatmul.f32.vlgmr.msrb.gmra.mxu2 %v511_v10 }
 0x369   :  { %v431_v12 = vpop.f32.mrf.mxu2 }
 0x36a   :  { %v432_v13 = vadd.f32 %v503_v11, %v431_v12 }
 0x36c   :  { %434 = vst [vmem:[#allocation13] sm:$0xff] %v432_v13 }
 0x36d   :  { %445 = dma.vmem_to_hbm [thread:$0]  %s441_s12, 128, %s443_s30, [#allocation4]  }
 0x36e   :  { %736 = dma.done.wait [#allocation4], 128  }
 0x36f   :  { %737 = vsyncadd [#allocation4], 4294967168 }
 0x370   :  { %738 = dma.done.wait [#allocation15], 256  }
 0x371   :  { %739 = vsyncadd [#allocation15], 4294967040 }
 0x372   :  { %480 = vsyncpa [#allocation3], 1 }
 0x373   :  { %481 = vsyncpa [#allocation6], 1 }
 0x374   :  { %482 = vsyncpa [#allocation9], 1 }
 0x375   :  { %483 = vsyncpa [#allocation12], 1 }
 0x376   :  { %484 = vsyncpa [#allocation4], 1 }
 0x377   :  { %485 = vsyncpa [#allocation15], 1 }

</bundles_post_ra>
